<compile_context>
chip_gen: v6e
topology: v6e:2x2x1
jax: 0.10.0
libtpu: 0.0.40
codegen_flags: <defaults>
</compile_context>

<pallas_src>
import jax
import jax.numpy as jnp
from jax.experimental import pallas as pl
from jax.experimental.pallas import tpu as pltpu

EPS = 1e-12  # F.normalize default eps


def message_norm_kernel(scale_ref, feats_ref, msg_ref, out_ref):
    """One [tm, D] row tile: out = msg * (||feats|| * scale / max(||msg||, eps))."""
    feats = feats_ref[...].astype(jnp.float32)               # [tm, D]
    msg = msg_ref[...].astype(jnp.float32)                   # [tm, D]
    scale = scale_ref[0]                                      # SMEM scalar (f32)

    msg_sq = jnp.sum(msg * msg, axis=-1, keepdims=True)       # [tm, 1] XLU reduce
    feats_sq = jnp.sum(feats * feats, axis=-1, keepdims=True)

    msg_norm = jnp.sqrt(msg_sq)
    feats_norm = jnp.sqrt(feats_sq)

    # Single fused per-row factor; one VPU broadcast-multiply pass over the tile.
    factor = (feats_norm * scale) / jnp.maximum(msg_norm, EPS)
    out_ref[...] = (msg * factor).astype(out_ref.dtype)


def _round_up(x, m):
    return ((x + m - 1) // m) * m


def _pick_block_rows(n_rows, d, itemsize, row_mult, target_bytes=4 << 20):
    """Row-tile (multiple of row_mult) targeting ~4 MiB per buffer, >=2 grid steps."""
    rows = max(row_mult,
               (target_bytes // max(d * itemsize, 1)) // row_mult * row_mult)
    # Guarantee at least 2 grid steps when N allows it (v7x megacore + pipelining).
    if n_rows >= 2 * row_mult:
        rows = min(rows, _round_up(pl.cdiv(n_rows, 2), row_mult))
    # Never exceed one (row-aligned) block covering everything.
    rows = min(rows, _round_up(n_rows, row_mult))
    return int(rows)


def message_norm(feats, msg, scale):
    """MessageNorm forward.  feats, msg: [..., D]; scale: scalar / shape-(1,) param."""
    # TODO(synk): only p=2 (the module default) is implemented for feats.norm(p=p).
    orig_shape = msg.shape
    D = orig_shape[-1]

    out_dtype = jnp.result_type(feats.dtype, msg.dtype)       # preserve input dtype
    feats2 = jnp.asarray(feats, out_dtype).reshape(-1, D)
    msg2 = jnp.asarray(msg, out_dtype).reshape(-1, D)
    N = msg2.shape[0]

    itemsize = jnp.dtype(out_dtype).itemsize
    row_mult = max(8, 32 // itemsize)                          # 8 (f32) / 16 (bf16)

    tm = _pick_block_rows(N, D, itemsize, row_mult)
    grid = (pl.cdiv(N, tm),)                                   # ragged last block OK

    scale_arr = jnp.asarray(scale, jnp.float32).reshape(1)

    cost = pl.CostEstimate(flops=5 * N * D, transcendentals=2 * N,
                           bytes_accessed=3 * N * D * itemsize)

    out2 = pl.pallas_call(
        message_norm_kernel,
        out_shape=jax.ShapeDtypeStruct((N, D), out_dtype),
        grid=grid,
        in_specs=[
            pl.BlockSpec(memory_space=pltpu.MemorySpace.SMEM),   # scale scalar
            pl.BlockSpec((tm, D), lambda i: (i, 0)),             # feats tile
            pl.BlockSpec((tm, D), lambda i: (i, 0)),             # msg tile
        ],
        out_specs=pl.BlockSpec((tm, D), lambda i: (i, 0)),
        compiler_params=pltpu.CompilerParams(
            dimension_semantics=("parallel",),
            vmem_limit_bytes=48 << 20),                          # safe on v7x's 64 MiB
        cost_estimate=cost,
    )(scale_arr, feats2, msg2)

    return out2.reshape(orig_shape)


def message_norm_reference(feats, msg, scale):
    """Pure-JAX reference mirroring the PyTorch module (math in f32)."""
    out_dtype = jnp.result_type(feats.dtype, msg.dtype)
    msg32 = jnp.asarray(msg, jnp.float32)
    feats32 = jnp.asarray(feats, jnp.float32)
    msg_n = msg32 / jnp.maximum(
        jnp.linalg.norm(msg32, axis=-1, keepdims=True), EPS)
    feats_norm = jnp.linalg.norm(feats32, axis=-1, keepdims=True)
    out = msg_n * feats_norm * jnp.asarray(scale, jnp.float32).reshape(())
    return out.astype(out_dtype)


if __name__ == "__main__":
    key = jax.random.PRNGKey(0)
    k1, k2, k3, k4, k5, k6 = jax.random.split(key, 6)

    scale = jnp.array([1.0], jnp.float32)  # learnable scale parameter, init 1.0

    # Case 1: small, non-aligned shapes (ragged last block + D not multiple of 128).
    N1, D1 = 20, 32
    feats1 = jax.random.normal(k1, (N1, D1), jnp.float32)
    msg1 = jax.random.normal(k2, (N1, D1), jnp.float32)
    out1 = jax.block_until_ready(message_norm(feats1, msg1, scale))
    ref1 = message_norm_reference(feats1, msg1, scale)
    assert out1.shape == (N1, D1) and out1.dtype == jnp.float32
    assert bool(jnp.all(jnp.isfinite(out1)))
    assert bool(jnp.allclose(out1, ref1, rtol=1e-5, atol=1e-5)), "case1 mismatch"

    # Case 2: 3-D graph-style input (batch of node blocks), lane-aligned D.
    B2, S2, D2 = 2, 8, 128
    feats2 = jax.random.normal(k3, (B2, S2, D2), jnp.float32)
    msg2 = jax.random.normal(k4, (B2, S2, D2), jnp.float32)
    out2 = jax.block_until_ready(message_norm(feats2, msg2, scale))
    ref2 = message_norm_reference(feats2, msg2, scale)
    assert out2.shape == (B2, S2, D2) and out2.dtype == jnp.float32
    assert bool(jnp.all(jnp.isfinite(out2)))
    assert bool(jnp.allclose(out2, ref2, rtol=1e-5, atol=1e-5)), "case2 mismatch"

    # Case 3: bf16 inputs stay bf16 through HBM and in the output.
    N3, D3 = 48, 80
    feats3 = jax.random.normal(k5, (N3, D3), jnp.float32).astype(jnp.bfloat16)
    msg3 = jax.random.normal(k6, (N3, D3), jnp.float32).astype(jnp.bfloat16)
    out3 = jax.block_until_ready(message_norm(feats3, msg3, scale))
    ref3 = message_norm_reference(feats3, msg3, scale)
    assert out3.shape == (N3, D3) and out3.dtype == jnp.bfloat16
    assert bool(jnp.all(jnp.isfinite(out3.astype(jnp.float32))))
    assert bool(jnp.allclose(out3.astype(jnp.float32), ref3.astype(jnp.float32),
                             rtol=2e-2, atol=2e-2)), "case3 mismatch"

    print("KERNEL_OK")
</pallas_src>

<mosaic_0001>
module attributes {stable_mosaic.version = 11 : i64} {
  func.func @message_norm_kernel(%arg0: i32, %arg1: memref<1xf32, #tpu.memory_space<smem>>, %arg2: memref<16x32xf32, #tpu.memory_space<vmem>>, %arg3: memref<16x32xf32, #tpu.memory_space<vmem>>, %arg4: memref<16x32xf32, #tpu.memory_space<vmem>>) attributes {dimension_semantics = [#tpu.dimension_semantics<parallel>], iteration_bounds = array<i64: 2>, scalar_prefetch = 0 : i64, scratch_operands = 0 : i64, tpu.core_type = #tpu.core_type<tc>, window_params = [{transform_indices = @transform_0, window_bounds = array<i64: 1>}, {transform_indices = @transform_1, window_bounds = array<i64: 16, 32>}, {transform_indices = @transform_2, window_bounds = array<i64: 16, 32>}, {transform_indices = @transform_3, window_bounds = array<i64: 16, 32>}]} {
    %c0 = arith.constant 0 : index
    %c0_0 = arith.constant 0 : index
    %0 = vector.load %arg2[%c0, %c0_0] : memref<16x32xf32, #tpu.memory_space<vmem>>, vector<16x32xf32>
    %c0_1 = arith.constant 0 : index
    %c0_2 = arith.constant 0 : index
    %1 = vector.load %arg3[%c0_1, %c0_2] : memref<16x32xf32, #tpu.memory_space<vmem>>, vector<16x32xf32>
    %c0_3 = arith.constant 0 : index
    %2 = memref.load %arg1[%c0_3] : memref<1xf32, #tpu.memory_space<smem>>
    %3 = arith.mulf %1, %1 : vector<16x32xf32>
    %cst = arith.constant dense<0.000000e+00> : vector<16xf32>
    %4 = vector.multi_reduction <add>, %3, %cst [1] : vector<16x32xf32> to vector<16xf32>
    %5 = vector.shape_cast %4 : vector<16xf32> to vector<16x1xf32>
    %6 = arith.mulf %0, %0 : vector<16x32xf32>
    %cst_4 = arith.constant dense<0.000000e+00> : vector<16xf32>
    %7 = vector.multi_reduction <add>, %6, %cst_4 [1] : vector<16x32xf32> to vector<16xf32>
    %8 = vector.shape_cast %7 : vector<16xf32> to vector<16x1xf32>
    %9 = math.sqrt %5 : vector<16x1xf32>
    %10 = math.sqrt %8 : vector<16x1xf32>
    %11 = vector.broadcast %2 : f32 to vector<16x1xf32>
    %12 = arith.mulf %10, %11 : vector<16x1xf32>
    %cst_5 = arith.constant 9.99999996E-13 : f32
    %13 = vector.broadcast %cst_5 : f32 to vector<16x1xf32>
    %14 = arith.maximumf %9, %13 : vector<16x1xf32>
    %15 = arith.divf %12, %14 : vector<16x1xf32>
    %16 = vector.broadcast %15 : vector<16x1xf32> to vector<16x32xf32>
    %17 = arith.mulf %1, %16 : vector<16x32xf32>
    %c0_6 = arith.constant 0 : index
    %c0_7 = arith.constant 0 : index
    %18 = vector.load %arg4[%c0_6, %c0_7] : memref<16x32xf32, #tpu.memory_space<vmem>>, vector<16x32xf32>
    tpu.vector_store %arg4[%c0_6, %c0_7], %17 {strides = array<i32>} : memref<16x32xf32, #tpu.memory_space<vmem>>, vector<16x32xf32>,
    return
  }
  func.func @transform_0(%arg0: i32) -> i32 {
    %c0_i32 = arith.constant 0 : i32
    %c0_i32_0 = arith.constant 0 : i32
    return %c0_i32 : i32
  }
  func.func @transform_1(%arg0: i32) -> (i32, i32) {
    %c0_i32 = arith.constant 0 : i32
    %c0_i32_0 = arith.constant 0 : i32
    return %arg0, %c0_i32 : i32, i32
  }
  func.func @transform_2(%arg0: i32) -> (i32, i32) {
    %c0_i32 = arith.constant 0 : i32
    %c0_i32_0 = arith.constant 0 : i32
    return %arg0, %c0_i32 : i32, i32
  }
  func.func @transform_3(%arg0: i32) -> (i32, i32) {
    %c0_i32 = arith.constant 0 : i32
    %c0_i32_0 = arith.constant 0 : i32
    return %arg0, %c0_i32 : i32, i32
  }
}

</mosaic_0001>

<bundles_post_ra>
// kernel: tpu_custom_call.1
= control target key start
LH: loop header
LB: loop body
LE: loop exit
PB: predicated region body
PF: predicated region fallthrough
CT: control target
= control target key end

     0   :  { %s919_s0 = inlined_call_operand.<no memory space> [shape: f32[1], index: 0, kind: input, shape index: {}]   ;;  %s920_s1 = inlined_call_operand.hbm [shape: f32[20,32], index: 1, kind: input, shape index: {}]   ;;  %s921_s2 = inlined_call_operand.hbm [shape: f32[20,32], index: 2, kind: input, shape index: {}]   ;;  %s922_s3 = inlined_call_operand.hbm [shape: f32[20,32], index: 3, kind: output, shape index: {}]  }
   0x1   :  { %8 = sst [smem:[#allocation2]] %s919_s0 }
   0x2   :  { %9 = vsyncpa [#allocation4], 0 }
   0x3   :  { %11 = vsyncpa [#allocation4 + $0x1], 0 }
   0x4   :  { %12 = vsyncpa [#allocation7], 0 }
   0x5   :  { %14 = vsyncpa [#allocation7 + $0x1], 0 }
   0x6   :  { %15 = vsyncpa [#allocation5], 0 }
   0x7   :  { %17 = vsyncpa [#allocation5 + $0x1], 0  ;;  %s681_s14 = smov 0   ;;  %s683_s15 = smov 0  }
   0x8   :  { %s685_s16 = smov 0   ;;  %s687_s17 = smov 0  }
   0x9 LB: > { %s702_s0 = sadd.s32 4294967295, %s647_s17   ;;  %s436_s18 = sadd.s32 4294967294, %s647_s17   ;;  %s647_s17 = sphi %s687_s17, %s934_s17   ;;  %s643_s16 = sphi %s685_s16, %s933_s16   ;;  %s639_s15 = sphi %s683_s15, %s932_s15   ;;  %s635_s14 = sphi %s681_s14, %s931_s14  }
   0xa   : > { %s706_s19 = sadd.s32 1, %s647_s17   ;;  %s51_s20 = sadd.s32 1, %s643_s16 }
   0xb   : > { %s48_s21 = ssub.s32 %s647_s17, %s706_s19  ;;  %p58_p0 = scmp.ne.s32.totalorder %s643_s16, %s639_s15 }
   0xc   : > { %p49_p1 = scmp.eq.s32.totalorder %s48_s21, 0  ;;  %p59_p2 = scmp.eq.s32.totalorder %s647_s17, 0 }
   0xd   : > { %p64_p3 = scmp.ne.s32.totalorder %s639_s15, %s635_s14  ;;  %p65_p4 = scmp.eq.s32.totalorder %s702_s0, 0 }
   0xe   : > { %s718_s22 = scalar_select %p49_p1, %s643_s16, %s51_s20  }
   0xf   : > { %p720_p5 = por %p59_p2, %p58_p0  ;;  %p724_p6 = por %p65_p4, %p64_p3 }
  0x10   : > { %p114_p7 = scmp.eq.s32.totalorder %s702_s0, 1  ;;  %p120_p8 = scmp.eq.s32.totalorder %s436_s18, 1 }
  0x11   : > { %p923_p11 = scmp.ge.s32.totalorder %s647_s17, 2 }
  0x12   : > { %p729_p9 = por %p114_p7, %p58_p0  ;;  %p733_p10 = por %p120_p8, %p64_p3 }
  0x13   : > { %139 = sbr.rel (%p923_p11) target bundleno = 88 (0x58), region = 20 }
  0x14   : > { %s926_s25 = scalar_select %p729_p9, 1, 0 }
  0x15   : > { %s927_s26 = scalar_select %p733_p10, 1, 0 }
  0x18   : > { %142 = sbr.rel (!%p720_p5) target bundleno = 56 (0x38), region = 24  ;;  %s143_s27 = sand.u32 (%p720_p5), 1, %s643_s16  }
  0x19   : > { %s440_s28 = sshll.u32 (%p720_p5), %s647_s17, 1  ;;  %s439_s29 = sshll.u32 (%p720_p5), %s143_s27, 4 }
  0x1a   : > { %s149_s30 = ssub.s32 (%p720_p5), 3, %s440_s28  ;;  %s747_s6 = scalar_lea.sflag (%p720_p5), [#allocation4], %s143_s27 }
  0x1b   : > { %p150_p12 = scmp.lt.s32.totalorder (%p720_p5), %s149_s30, 2  ;;  %s147_s7 = scalar_lea.vmem (%p720_p5), [#allocation3], %s439_s29 }
  0x1d   : > { %s936_s30 = smov (!%p150_p12, %s149_s30), 2 }
  0x1e   : > { %s744_s4 = sshll.u32 %s936_s30, 7 }
  0x1f   : > { %s154_s5 = ssub.s32 256, %s744_s4 }
  0x20   : > { %155 = vsyncadd %s747_s6, %s154_s5  ;;  %p442_p13 = scmp.ne.s32.totalorder %s744_s4, 0  ;;  %s466_s8 = sshll.u32 %s647_s17, 8 }
  0x21   : > { %s755_s11 = scalar_lea.hbm %s920_s1, %s466_s8  ;;  %s160_s12 = sshll.u32 %s147_s7, 4  ;;  %s757_s12 = int_to_ptr.vmem [resolvable:$true] %s160_s12 }
  0x22   : > { %s527_s13 = scalar_lea.hbm %s755_s11, %s744_s4  ;;  %s531_s21 = scalar_lea.hbm %s920_s1, 384 }
  0x23   : > { %p528_p0 = scmp.ne.s32.totalorder %s755_s11, %s527_s13  ;;  %p532_p3 = scmp.lt.s32.totalorder %s755_s11, %s920_s1 }
  0x24   : > { %p533_p4 = scmp.lt.s32.totalorder %s531_s21, %s527_s13 }
  0x25   : > { %p529_p1 = pnand %p528_p0, %p442_p13 }
  0x26   : > { %p534_p7 = por %p533_p4, %p532_p3 }
  0x27   : > { %p530_p2 = pneg %p529_p1 }
  0x29   : > { %p535_p8 = pnand %p534_p7, %p530_p2 }
  0x2b   : > { %538 = shalt.err (!%p535_p8)
}
  0x2c   : > { %s539_s29 = scalar_lea.vmem %s757_s12, %s744_s4  ;;  %s649_s30 = smov [#allocation3]  }
  0x2d   : > { %p540_p12 = scmp.ne.s32.totalorder %s757_s12, %s539_s29  ;;  %s543_s5 = sshll.u32 %s649_s30, 4  ;;  %s544_s5 = int_to_ptr.vmem [resolvable:$false] %s543_s5 }
  0x2e   : > { %s545_s7 = scalar_lea.vmem %s544_s5, 512  ;;  %p546_p11 = scmp.lt.s32.totalorder %s757_s12, %s544_s5 }
  0x2f   : > { %p541_p0 = pnand %p540_p12, %p442_p13  ;;  %p547_p10 = scmp.lt.s32.totalorder %s545_s7, %s539_s29 }
  0x31   : > { %p542_p1 = pneg %p541_p0  ;;  %p548_p9 = por %p547_p10, %p546_p11 }
  0x33   : > { %p549_p3 = pnand %p548_p9, %p542_p1 }
  0x35   : > { %552 = shalt.err (!%p549_p3)
}
  0x36   : > { %s650_s8 = smov 128   ;;  %s651_s9 = smov 8  }
  0x37   : > { %166 = dma.hbm_to_vmem [thread:$0]  (%p442_p13), %s755_s11, %s744_s4, %s757_s12, %s747_s6, %s650_s8, %s650_s8, %s651_s9  }
  0x38 PF: > { %169 = sbr.rel (!%p720_p5) target bundleno = 88 (0x58), region = 28  ;;  %s170_s10 = sand.u32 (%p720_p5), 1, %s643_s16  }
  0x39   : > { %s447_s13 = sshll.u32 (%p720_p5), %s647_s17, 1  ;;  %s446_s18 = sshll.u32 (%p720_p5), %s170_s10, 4 }
  0x3a   : > { %s176_s20 = ssub.s32 (%p720_p5), 3, %s447_s13  ;;  %s790_s28 = scalar_lea.sflag (%p720_p5), [#allocation7], %s170_s10 }
  0x3b   : > { %p177_p9 = scmp.lt.s32.totalorder (%p720_p5), %s176_s20, 2  ;;  %s174_s4 = scalar_lea.vmem (%p720_p5), [#allocation6], %s446_s18 }
  0x3d   : > { %s938_s20 = smov (!%p177_p9, %s176_s20), 2 }
  0x3e   : > { %s787_s21 = sshll.u32 %s938_s20, 7 }
  0x3f   : > { %s181_s27 = ssub.s32 256, %s787_s21 }
  0x40   : > { %182 = vsyncadd %s790_s28, %s181_s27  ;;  %p449_p5 = scmp.ne.s32.totalorder %s787_s21, 0  ;;  %s467_s23 = sshll.u32 %s647_s17, 8 }
  0x41   : > { %s798_s12 = scalar_lea.hbm %s921_s2, %s467_s23  ;;  %s187_s29 = sshll.u32 %s174_s4, 4  ;;  %s800_s29 = int_to_ptr.vmem [resolvable:$true] %s187_s29 }
  0x42   : > { %s553_s30 = scalar_lea.hbm %s798_s12, %s787_s21  ;;  %s557_s8 = scalar_lea.hbm %s921_s2, 384 }
  0x43   : > { %p554_p10 = scmp.ne.s32.totalorder %s798_s12, %s553_s30  ;;  %p558_p2 = scmp.lt.s32.totalorder %s798_s12, %s921_s2 }
  0x44   : > { %p559_p4 = scmp.lt.s32.totalorder %s557_s8, %s553_s30 }
  0x45   : > { %p555_p11 = pnand %p554_p10, %p449_p5 }
  0x46   : > { %p560_p7 = por %p559_p4, %p558_p2 }
  0x47   : > { %p556_p13 = pneg %p555_p11 }
  0x49   : > { %p561_p8 = pnand %p560_p7, %p556_p13 }
  0x4b   : > { %564 = shalt.err (!%p561_p8)
}
  0x4c   : > { %s565_s13 = scalar_lea.vmem %s800_s29, %s787_s21  ;;  %s652_s18 = smov [#allocation6]  }
  0x4d   : > { %p566_p12 = scmp.ne.s32.totalorder %s800_s29, %s565_s13  ;;  %s569_s20 = sshll.u32 %s652_s18, 4  ;;  %s570_s20 = int_to_ptr.vmem [resolvable:$false] %s569_s20 }
  0x4e   : > { %s571_s27 = scalar_lea.vmem %s570_s20, 512  ;;  %p572_p3 = scmp.lt.s32.totalorder %s800_s29, %s570_s20 }
  0x4f   : > { %p567_p0 = pnand %p566_p12, %p449_p5  ;;  %p573_p9 = scmp.lt.s32.totalorder %s571_s27, %s565_s13 }
  0x51   : > { %p568_p1 = pneg %p567_p0  ;;  %p574_p10 = por %p573_p9, %p572_p3 }
  0x53   : > { %p575_p11 = pnand %p574_p10, %p568_p1 }
  0x55   : > { %578 = shalt.err (!%p575_p11)
}
  0x56   : > { %s653_s4 = smov 128   ;;  %s654_s23 = smov 8  }
  0x57   : > { %193 = dma.hbm_to_vmem [thread:$0]  (%p449_p5), %s798_s12, %s787_s21, %s800_s29, %s790_s28, %s653_s4, %s653_s4, %s654_s23  }
  0x58 PF: > { %p453_p13 = scmp.ge.s32.totalorder %s647_s17, 1  ;;  %p195_p2 = scmp.lt.s32.totalorder %s647_s17, 3 }
  0x5a   : > { %p196_p4 = pnand %p453_p13, %p195_p2 }
  0x5b   : > { %s829_s6 = sand.u32 (!%p196_p4), 1, %s639_s15  }
  0x5c   : > { %199 = sbr.rel (%p196_p4) target bundleno = 312 (0x138), region = 32  ;;  %s832_s11 = sshll.u32 (!%p196_p4), %s829_s6, 4 }
  0x5d   : > { %s202_s30 = scalar_lea.sflag (!%p196_p4), [#allocation4], %s829_s6  ;;  %s205_s5 = scalar_lea.vmem (!%p196_p4), [#allocation3], %s832_s11 }
  0x61   : > { %622 = dma.done.wait (%p724_p6), %s202_s30, 256  }
  0x62   : > { %624 = vsyncadd (%p724_p6), %s202_s30, 4294967040  ;;  %s211_s21 = scalar_lea.sflag [#allocation7], %s829_s6  ;;  %s214_s28 = scalar_lea.vmem [#allocation6], %s832_s11 }
  0x63   : > { %626 = dma.done.wait (%p724_p6), %s211_s21, 256  }
  0x64   : > { %628 = vsyncadd (%p724_p6), %s211_s21, 4294967040  ;;  %v259_v0 = vld [vmem:[%s214_s28] sm:$0xff]  ;;  %vm264_vm0 = vcmask 261120   ;;  %v846_v2 = vld [vmem:[%s214_s28 + $0x8] sm:$0xff]  ;;  %s261_s24 = sld [smem:[#allocation2]]  ;;  %s241_s12 = scalar_lea.vmem [#allocation8], %s832_s11 }
  0x65   : > { %v257_v1 = vld [vmem:[%s205_s5] sm:$0xff]  ;;  %v262_v3 = vmul.f32 %v259_v0, %v259_v0  ;;  %v263_v5 = vmul.f32 %v846_v2, %v846_v2  ;;  %v258_v6 = vld [vmem:[%s205_s5 + $0x8] sm:$0xff]  ;;  %s321_s29 = scalar_lea.sflag [#allocation5], %s829_s6  ;;  %p928_p6 = scmp.ne.s32.totalorder %s926_s25, 0 }
  0x66   : > { %v271_v4 = vmul.f32 %v257_v1, %v257_v1  ;;  %v272_v7 = vmul.f32 %v258_v6, %v258_v6  ;;  %s458_s7 = sshll.u32 (%p928_p6), %s702_s0, 1 }
  0x67   : > { %v265_v8 = vsel %vm264_vm0, %v262_v3, 0.0  ;;  %v268_v10 = vsel %vm264_vm0, %v263_v5, 0.0  ;;  %s329_s8 = ssub.s32 (%p928_p6), 3, %s458_s7 }
  0x68   : > { %v273_v9 = vsel %vm264_vm0, %v271_v4, 0.0  ;;  %266 = vadd.xlane.f32.xlu0 %v265_v8  ;;  %v276_v11 = vsel %vm264_vm0, %v272_v7, 0.0  ;;  %p330_p5 = scmp.lt.s32.totalorder (%p928_p6), %s329_s8, 2 }
  0x69   : > { %274 = vadd.xlane.f32.xlu1 %v273_v9 }
  0x6a   : > { %v307_v35 = vstv %s261_s24 }
  0x6c   : > { %269 = vadd.xlane.f32.xlu0 %v268_v10 }
  0x6d   : > { %277 = vadd.xlane.f32.xlu1 %v276_v11 }
  0xf1   : > { %v267_v12 = vpop.xlane.xlu0 %266 }
  0xf2   : > { %515 = vrsqrt.f32 %v267_v12  ;;  %v275_v13 = vpop.xlane.xlu1 %274  ;;  %vm281_vm1 = vcmp.eq.f32.partialorder %v267_v12, inf  ;;  %v284_v18 = vand.u32 2147483648, %v267_v12  ;;  %vm283_vm2 = vcmp.eq.f32.partialorder %v267_v12, 0.0 }
  0xf3   : > { %vm295_vm5 = vcmp.eq.f32.partialorder %v275_v13, inf  ;;  %v298_v31 = vand.u32 2147483648, %v275_v13  ;;  %vm297_vm7 = vcmp.eq.f32.partialorder %v275_v13, 0.0 }
  0xf5   : > { %v270_v14 = vpop.xlane.xlu0 %269 }
  0xf6   : > { %517 = vrsqrt.f32 %v270_v14  ;;  %v278_v15 = vpop.xlane.xlu1 %277  ;;  %vm288_vm3 = vcmp.eq.f32.partialorder %v270_v14, inf  ;;  %v291_v25 = vand.u32 2147483648, %v270_v14  ;;  %vm290_vm4 = vcmp.eq.f32.partialorder %v270_v14, 0.0 }
  0xf7   : > { %519 = vrsqrt.f32 %v275_v13  ;;  %vm302_vm6 = vcmp.eq.f32.partialorder %v278_v15, inf  ;;  %v305_v36 = vand.u32 2147483648, %v278_v15  ;;  %vm304_vm8 = vcmp.eq.f32.partialorder %v278_v15, 0.0 }
  0xf8   : > { %521 = vrsqrt.f32 %v278_v15 }
  0xff   : > { %v516_v16 = vpop.eup %515 }
 0x100   : > { %v280_v17 = vmul.f32 %v516_v16, %v267_v12 }
 0x102   : > { %v282_v19 = vsel %vm281_vm1, %v267_v12, %v280_v17 }
 0x103   : > { %v518_v20 = vpop.eup %517  ;;  %v285_v21 = vsel %vm283_vm2, %v284_v18, %v282_v19 }
 0x104   : > { %v310_v22 = vmax.f32 %v285_v21, 1e-12  ;;  %v287_v23 = vmul.f32 %v518_v20, %v270_v14  ;;  %v520_v24 = vpop.eup %519 }
 0x105   : > { %v294_v28 = vmul.f32 %v520_v24, %v275_v13  ;;  %v522_v30 = vpop.eup %521 }
 0x106   : > { %523 = vrcp.f32 %v310_v22  ;;  %v289_v26 = vsel %vm288_vm3, %v270_v14, %v287_v23  ;;  %v301_v33 = vmul.f32 %v522_v30, %v278_v15 }
 0x107   : > { %v292_v27 = vsel %vm290_vm4, %v291_v25, %v289_v26  ;;  %v296_v32 = vsel %vm295_vm5, %v275_v13, %v294_v28 }
 0x108   : > { %v311_v29 = vmax.f32 %v292_v27, 1e-12  ;;  %v299_v34 = vsel %vm297_vm7, %v298_v31, %v296_v32  ;;  %v303_v37 = vsel %vm302_vm6, %v278_v15, %v301_v33 }
 0x109   : > { %v308_v38 = vmul.f32 %v307_v35, %v299_v34  ;;  %v306_v40 = vsel %vm304_vm8, %v305_v36, %v303_v37 }
 0x10a   : > { %525 = vrcp.f32 %v311_v29  ;;  %v309_v43 = vmul.f32 %v307_v35, %v306_v40 }
 0x113   : > { %v524_v39 = vpop.eup %523 }
 0x114   : > { %v313_v41 = vmul.f32 %v524_v39, %v308_v38 }
 0x116   : > { %v316_v42 = vmul.f32 %v313_v41, %v259_v0 }
 0x117   : > { %v526_v44 = vpop.eup %525 }
 0x118   : > { %318 = vst.msk [vmem:[%s241_s12] sm:$0xff] %vm264_vm0, %v316_v42  ;;  %v315_v45 = vmul.f32 %v526_v44, %v309_v43  ;;  %327 = sbr.rel (!%p928_p6) target bundleno = 312 (0x138), region = 44 }
 0x11a   : > { %v317_v46 = vmul.f32 %v315_v45, %v846_v2 }
 0x11c   : > { %319 = vst.msk [vmem:[%s241_s12 + $0x8] sm:$0xff] %vm264_vm0, %v317_v46 }
 0x11d   : > { %s940_s8 = smov (!%p330_p5, %s329_s8), 2 }
 0x11e   : > { %s862_s9 = sshll.u32 %s940_s8, 7 }
 0x11f   : > { %s334_s10 = ssub.s32 256, %s862_s9 }
 0x120   : > { %335 = vsyncadd %s321_s29, %s334_s10  ;;  %p460_p7 = scmp.ne.s32.totalorder %s862_s9, 0  ;;  %s468_s13 = sshll.u32 %s702_s0, 8 }
 0x121   : > { %s872_s20 = scalar_lea.hbm %s922_s3, %s468_s13  ;;  %s340_s27 = sshll.u32 %s241_s12, 4  ;;  %s874_s27 = int_to_ptr.vmem [resolvable:$true] %s340_s27 }
 0x122   : > { %s579_s4 = scalar_lea.vmem %s874_s27, %s862_s9  ;;  %s655_s23 = smov [#allocation8]  }
 0x123   : > { %p580_p8 = scmp.ne.s32.totalorder %s874_s27, %s579_s4  ;;  %s583_s11 = sshll.u32 %s655_s23, 4  ;;  %s584_s11 = int_to_ptr.vmem [resolvable:$false] %s583_s11 }
 0x124   : > { %s585_s0 = scalar_lea.vmem %s584_s11, 512  ;;  %p586_p1 = scmp.lt.s32.totalorder %s874_s27, %s584_s11 }
 0x125   : > { %p581_p12 = pnand %p580_p8, %p460_p7  ;;  %p587_p3 = scmp.lt.s32.totalorder %s585_s0, %s579_s4 }
 0x127   : > { %p582_p0 = pneg %p581_p12  ;;  %p588_p9 = por %p587_p3, %p586_p1 }
 0x129   : > { %p589_p10 = pnand %p588_p9, %p582_p0 }
 0x12b   : > { %592 = shalt.err (!%p589_p10)
}
 0x12c   : > { %s593_s30 = scalar_lea.hbm %s872_s20, %s862_s9  ;;  %s597_s28 = scalar_lea.hbm %s922_s3, 384 }
 0x12d   : > { %p594_p11 = scmp.ne.s32.totalorder %s872_s20, %s593_s30  ;;  %p598_p4 = scmp.lt.s32.totalorder %s872_s20, %s922_s3 }
 0x12e   : > { %p599_p6 = scmp.lt.s32.totalorder %s597_s28, %s593_s30 }
 0x12f   : > { %p595_p13 = pnand %p594_p11, %p460_p7 }
 0x130   : > { %p600_p5 = por %p599_p6, %p598_p4 }
 0x131   : > { %p596_p2 = pneg %p595_p13 }
 0x133   : > { %p601_p8 = pnand %p600_p5, %p596_p2 }
 0x135   : > { %604 = shalt.err (!%p601_p8)
}
 0x136   : > { %s656_s7 = smov 128   ;;  %s657_s8 = smov 8  }
 0x137   : > { %346 = dma.vmem_to_hbm [thread:$0]  (%p460_p7), %s874_s27, %s862_s9, %s872_s20, %s321_s29, %s656_s7, %s656_s7, %s657_s8  }
 0x138 PF: > { %s355_s10 = sand.u32 1, %s635_s14   ;;  %p929_p12 = scmp.ne.s32.totalorder %s927_s26, 0 }
 0x139   : > { %p930_p0 = scmp.ge.s32.totalorder %s647_s17, 2  ;;  %s356_s13 = scalar_lea.sflag [#allocation5], %s355_s10 }
 0x13b   : > { %p473_p1 = pnand %p930_p0, %p929_p12 }
 0x13d   : > { %p474_p3 = pneg %p473_p1 }
 0x13f   : > { %630 = dma.done.wait (%p474_p3), %s356_s13, 256  }
 0x140   : > { %632 = vsyncadd (%p474_p3), %s356_s13, 4294967040  ;;  %p20_p9 = scmp.ge.s32.totalorder %s706_s19, 4   ;;  %s931_s14 = smov %s639_s15 }
 0x141   : > { %s932_s15 = smov %s643_s16  ;;  %s933_s16 = smov %s718_s22 }
 0x142   : > { %s934_s17 = smov %s706_s19  ;;  %22 = sbr.rel (!%p20_p9) target bundleno = 9 (0x9), region = 90 }
 0x147   :  { %361 = vsyncpa [#allocation4], 1 }
 0x148   :  { %363 = vsyncpa [#allocation4 + $0x1], 1 }
 0x149   :  { %364 = vsyncpa [#allocation7], 1 }
 0x14a   :  { %366 = vsyncpa [#allocation7 + $0x1], 1 }
 0x14b   :  { %367 = vsyncpa [#allocation5], 1 }
 0x14c   :  { %369 = vsyncpa [#allocation5 + $0x1], 1 }

</bundles_post_ra>
